<compile_context>
chip_gen: v5e
topology: v5e:2x2
jax: 0.10.0
libtpu: 0.0.40
codegen_flags: <defaults>
</compile_context>

<pallas_src>
import functools

import jax
import jax.numpy as jnp
from jax.experimental import pallas as pl
from jax.experimental.pallas import tpu as pltpu

HID = 128            # hidden width (100) zero-padded to the 128-lane width
N_OUT = 2            # true output width, written directly
DEFAULT_TILE = 2048  # default batch tile (review: 1024-4096 sweet spot)


def _mlp_kernel(s_ref, t_ref, w1s_ref, w1t_ref, b1_ref, w2_ref, b2_ref,
                w3_ref, b3_ref, w4_ref, b4_ref, o_ref):
    s = s_ref[...]                      # (tile, 2)  f32 state
    tt = t_ref[...]                     # (tile, 1)  f32 time
    w1s = w1s_ref[...]                  # (2, 128)   f32

    # fc1 + relu on the VPU: three broadcast multiply-adds (K=3 would waste the
    # MXU; VALU slots are otherwise idle while the GEMMs run).
    h = (s[:, 0:1] * w1s[0:1, :]
         + s[:, 1:2] * w1s[1:2, :]
         + tt * w1t_ref[...]
         + b1_ref[...])
    h = jnp.maximum(h, 0.0)

    # fc2..fc4 on the MXU, f32 accumulation. Operand dtype follows the prepared
    # weights: f32 (parity mode) or bf16 (fast mode on v6e/v7x).
    h = jnp.dot(h.astype(w2_ref.dtype), w2_ref[...],
                preferred_element_type=jnp.float32) + b2_ref[...]
    h = jnp.maximum(h, 0.0)
    h = jnp.dot(h.astype(w3_ref.dtype), w3_ref[...],
                preferred_element_type=jnp.float32) + b3_ref[...]
    h = jnp.maximum(h, 0.0)
    # fc4 (no activation): keep the matmul lane-aligned (128 cols, zero-padded
    # weight columns are inert), then store only the 2 real output lanes.
    h = jnp.dot(h.astype(w4_ref.dtype), w4_ref[...],
                preferred_element_type=jnp.float32) + b4_ref[...]
    o_ref[...] = h[:, :N_OUT]


def _pad2d(a, rows, cols):
    out = jnp.zeros((rows, cols), dtype=jnp.float32)
    return out.at[: a.shape[0], : a.shape[1]].set(a.astype(jnp.float32))


def init_params(key, n_hidden=100):
    """Deterministic parameter init matching nn.Linear shapes (stored as (in, out))."""
    ks = jax.random.split(key, 8)

    def lin(kw, kb, fan_in, fan_out):
        bound = 1.0 / jnp.sqrt(fan_in)
        w = jax.random.uniform(kw, (fan_in, fan_out), jnp.float32, -bound, bound)
        b = jax.random.uniform(kb, (fan_out,), jnp.float32, -bound, bound)
        return w, b

    w1, b1 = lin(ks[0], ks[1], 3, n_hidden)
    w2, b2 = lin(ks[2], ks[3], n_hidden, n_hidden)
    w3, b3 = lin(ks[4], ks[5], n_hidden, n_hidden)
    w4, b4 = lin(ks[6], ks[7], n_hidden, 2)
    return (w1, b1, w2, b2, w3, b3, w4, b4)


def prepare_params(params, use_bf16=False):
    """One-time padding + W1 split to TPU-friendly shapes (out of the hot path).

    Zero padding is mathematically inert (zero weights/biases, relu(0)=0), so the
    f32 mode matches the unpadded reference exactly. use_bf16=True casts only the
    fc2/fc3/fc4 weights (the MXU-bound GEMMs) to bf16 — relaxed-tolerance mode.
    """
    w1, b1, w2, b2, w3, b3, w4, b4 = params
    mm_dtype = jnp.bfloat16 if use_bf16 else jnp.float32
    w1 = w1.astype(jnp.float32)
    return (
        _pad2d(w1[:2, :], 2, HID),                 # fc1 weight, state part (2,128)
        _pad2d(w1[2:3, :], 1, HID),                # fc1 weight, t part     (1,128)
        _pad2d(b1.reshape(1, -1), 1, HID),
        _pad2d(w2, HID, HID).astype(mm_dtype), _pad2d(b2.reshape(1, -1), 1, HID),
        _pad2d(w3, HID, HID).astype(mm_dtype), _pad2d(b3.reshape(1, -1), 1, HID),
        _pad2d(w4, HID, HID).astype(mm_dtype), _pad2d(b4.reshape(1, -1), 1, HID),
    )


def _round_up(x, m):
    return ((x + m - 1) // m) * m


def _cdiv(a, b):
    return -(-a // b)


@functools.partial(jax.jit, static_argnames=("block_rows",))
def net_forward(padded_params, state, t, block_rows=None):
    """Pallas-backed forward of Net: state (N,2), t (N,) or (N,1) -> (N,2)."""
    w1s, w1t, b1, w2, b2, w3, b3, w4, b4 = padded_params
    if t.ndim == 1:
        t = t.reshape(t.shape[0], 1)
    state = state.astype(jnp.float32)
    t = t.astype(jnp.float32)
    n = state.shape[0]

    if block_rows is None:
        # Big tile to amortize per-step overhead / MXU weight re-pushes, but
        # clamped so the batch grid has >=2 steps whenever possible (keeps both
        # TensorCores busy on v7x under the "parallel" dimension semantics).
        tile = min(DEFAULT_TILE, max(8, _round_up(_cdiv(n, 2), 8)))
    else:
        tile = min(block_rows, _round_up(n, 8))
    grid = (pl.cdiv(n, tile),)

    const = lambda i: (0, 0)   # weights/biases: DMA'd once, VMEM-resident
    cost = pl.CostEstimate(
        flops=2 * n * (3 * HID + 3 * HID * HID),
        transcendentals=0,
        bytes_accessed=(4 * n * (2 + 1 + N_OUT)
                        + 4 * (3 * HID + 4 * HID)
                        + 3 * HID * HID * w2.dtype.itemsize),
    )

    out = pl.pallas_call(
        _mlp_kernel,
        out_shape=jax.ShapeDtypeStruct((n, N_OUT), jnp.float32),
        grid=grid,
        in_specs=[
            pl.BlockSpec((tile, 2), lambda i: (i, 0)),   # state tile (streamed)
            pl.BlockSpec((tile, 1), lambda i: (i, 0)),   # t tile     (streamed)
            pl.BlockSpec((2, HID), const),               # fc1 weight (state part)
            pl.BlockSpec((1, HID), const),               # fc1 weight (t part)
            pl.BlockSpec((1, HID), const),               # fc1 bias
            pl.BlockSpec((HID, HID), const),             # fc2 weight
            pl.BlockSpec((1, HID), const),               # fc2 bias
            pl.BlockSpec((HID, HID), const),             # fc3 weight
            pl.BlockSpec((1, HID), const),               # fc3 bias
            pl.BlockSpec((HID, HID), const),             # fc4 weight (padded cols)
            pl.BlockSpec((1, HID), const),               # fc4 bias
        ],
        out_specs=pl.BlockSpec((tile, N_OUT), lambda i: (i, 0)),
        compiler_params=pltpu.CompilerParams(
            dimension_semantics=("parallel",)),          # megacore over batch tiles
        cost_estimate=cost,
    )(state, t, w1s, w1t, b1, w2, b2, w3, b3, w4, b4)
    return out


def _reference_forward(params, state, t):
    """Pure-JAX reference, mirrors the PyTorch module semantics."""
    w1, b1, w2, b2, w3, b3, w4, b4 = params
    if t.ndim == 1:
        t = t.reshape(t.shape[0], 1)
    x = jnp.hstack((state, t)).astype(jnp.float32)
    x = jnp.maximum(x @ w1 + b1, 0.0)
    x = jnp.maximum(x @ w2 + b2, 0.0)
    x = jnp.maximum(x @ w3 + b3, 0.0)
    return x @ w4 + b4


if __name__ == "__main__":
    key = jax.random.PRNGKey(0)
    k_param, k_state, k_t = jax.random.split(key, 3)

    n_hidden = 100   # module default
    params = init_params(k_param, n_hidden=n_hidden)
    padded = prepare_params(params)   # f32 parity mode, one-time prep

    # Case 1: tiny batch, 1-D t (exercises the reshape branch), single grid step.
    batch = 8
    state = jax.random.normal(k_state, (batch, 2), jnp.float32)
    t = jax.random.normal(k_t, (batch,), jnp.float32)
    out = jax.block_until_ready(net_forward(padded, state, t))
    ref = _reference_forward(params, state, t)
    assert out.shape == (batch, 2)
    assert jnp.allclose(out, ref, atol=1e-5, rtol=1e-5)

    # Case 2: explicit block_rows, multi-step grid with a partial last tile.
    batch2 = 40
    state2 = jax.random.normal(jax.random.fold_in(k_state, 1), (batch2, 2), jnp.float32)
    t2 = jax.random.normal(jax.random.fold_in(k_t, 1), (batch2, 1), jnp.float32)
    out2 = jax.block_until_ready(net_forward(padded, state2, t2, block_rows=16))
    ref2 = _reference_forward(params, state2, t2)
    assert out2.shape == (batch2, 2)
    assert jnp.allclose(out2, ref2, atol=1e-5, rtol=1e-5)

    # Case 3: default tiling path (auto-clamp produces >=2 grid steps).
    batch3 = 256
    state3 = jax.random.normal(jax.random.fold_in(k_state, 2), (batch3, 2), jnp.float32)
    t3 = jax.random.normal(jax.random.fold_in(k_t, 2), (batch3,), jnp.float32)
    out3 = jax.block_until_ready(net_forward(padded, state3, t3))
    ref3 = _reference_forward(params, state3, t3)
    assert out3.shape == (batch3, 2)
    assert jnp.allclose(out3, ref3, atol=1e-5, rtol=1e-5)

    # Optional bf16 fast path (v6e/v7x MXU-rate mode) — relaxed tolerance only.
    padded_bf16 = prepare_params(params, use_bf16=True)
    out_fast = jax.block_until_ready(net_forward(padded_bf16, state3, t3))
    assert out_fast.shape == (batch3, 2)
    assert jnp.allclose(out_fast, ref3, atol=1e-1, rtol=1e-1)

    print("KERNEL_OK")
</pallas_src>

<mosaic_0001>
module attributes {stable_mosaic.version = 11 : i64} {
  func.func @_mlp_kernel(%arg0: i32, %arg1: memref<8x2xf32, #tpu.memory_space<vmem>>, %arg2: memref<8x1xf32, #tpu.memory_space<vmem>>, %arg3: memref<2x128xf32, #tpu.memory_space<vmem>>, %arg4: memref<1x128xf32, #tpu.memory_space<vmem>>, %arg5: memref<1x128xf32, #tpu.memory_space<vmem>>, %arg6: memref<128x128xf32, #tpu.memory_space<vmem>>, %arg7: memref<1x128xf32, #tpu.memory_space<vmem>>, %arg8: memref<128x128xf32, #tpu.memory_space<vmem>>, %arg9: memref<1x128xf32, #tpu.memory_space<vmem>>, %arg10: memref<128x128xf32, #tpu.memory_space<vmem>>, %arg11: memref<1x128xf32, #tpu.memory_space<vmem>>, %arg12: memref<8x2xf32, #tpu.memory_space<vmem>>) attributes {dimension_semantics = [#tpu.dimension_semantics<parallel>], iteration_bounds = array<i64: 1>, scalar_prefetch = 0 : i64, scratch_operands = 0 : i64, tpu.core_type = #tpu.core_type<tc>, window_params = [{transform_indices = @transform_0, window_bounds = array<i64: 8, 2>}, {transform_indices = @transform_1, window_bounds = array<i64: 8, 1>}, {pipeline_mode = #tpu.pipeline_mode<synchronous>, transform_indices = @transform_2, window_bounds = array<i64: 2, 128>}, {pipeline_mode = #tpu.pipeline_mode<synchronous>, transform_indices = @transform_3, window_bounds = array<i64: 1, 128>}, {pipeline_mode = #tpu.pipeline_mode<synchronous>, transform_indices = @transform_4, window_bounds = array<i64: 1, 128>}, {pipeline_mode = #tpu.pipeline_mode<synchronous>, transform_indices = @transform_5, window_bounds = array<i64: 128, 128>}, {pipeline_mode = #tpu.pipeline_mode<synchronous>, transform_indices = @transform_6, window_bounds = array<i64: 1, 128>}, {pipeline_mode = #tpu.pipeline_mode<synchronous>, transform_indices = @transform_7, window_bounds = array<i64: 128, 128>}, {pipeline_mode = #tpu.pipeline_mode<synchronous>, transform_indices = @transform_8, window_bounds = array<i64: 1, 128>}, {pipeline_mode = #tpu.pipeline_mode<synchronous>, transform_indices = @transform_9, window_bounds = array<i64: 128, 128>}, {pipeline_mode = #tpu.pipeline_mode<synchronous>, transform_indices = @transform_10, window_bounds = array<i64: 1, 128>}, {transform_indices = @transform_11, window_bounds = array<i64: 8, 2>}]} {
    %c0 = arith.constant 0 : index
    %c0_0 = arith.constant 0 : index
    %0 = vector.load %arg1[%c0, %c0_0] : memref<8x2xf32, #tpu.memory_space<vmem>>, vector<8x2xf32>
    %c0_1 = arith.constant 0 : index
    %c0_2 = arith.constant 0 : index
    %1 = vector.load %arg2[%c0_1, %c0_2] : memref<8x1xf32, #tpu.memory_space<vmem>>, vector<8x1xf32>
    %c0_3 = arith.constant 0 : index
    %c0_4 = arith.constant 0 : index
    %2 = vector.load %arg3[%c0_3, %c0_4] : memref<2x128xf32, #tpu.memory_space<vmem>>, vector<2x128xf32>
    %3 = vector.extract_strided_slice %0 {offsets = [0, 0], sizes = [8, 1], strides = [1, 1]} : vector<8x2xf32> to vector<8x1xf32>
    %4 = vector.extract_strided_slice %2 {offsets = [0, 0], sizes = [1, 128], strides = [1, 1]} : vector<2x128xf32> to vector<1x128xf32>
    %5 = vector.broadcast %3 : vector<8x1xf32> to vector<8x128xf32>
    %6 = vector.broadcast %4 : vector<1x128xf32> to vector<8x128xf32>
    %7 = arith.mulf %5, %6 : vector<8x128xf32>
    %8 = vector.extract_strided_slice %0 {offsets = [0, 1], sizes = [8, 1], strides = [1, 1]} : vector<8x2xf32> to vector<8x1xf32>
    %9 = vector.extract_strided_slice %2 {offsets = [1, 0], sizes = [1, 128], strides = [1, 1]} : vector<2x128xf32> to vector<1x128xf32>
    %10 = vector.broadcast %8 : vector<8x1xf32> to vector<8x128xf32>
    %11 = vector.broadcast %9 : vector<1x128xf32> to vector<8x128xf32>
    %12 = arith.mulf %10, %11 : vector<8x128xf32>
    %13 = arith.addf %7, %12 : vector<8x128xf32>
    %c0_5 = arith.constant 0 : index
    %c0_6 = arith.constant 0 : index
    %14 = vector.load %arg4[%c0_5, %c0_6] : memref<1x128xf32, #tpu.memory_space<vmem>>, vector<1x128xf32>
    %15 = vector.broadcast %1 : vector<8x1xf32> to vector<8x128xf32>
    %16 = vector.broadcast %14 : vector<1x128xf32> to vector<8x128xf32>
    %17 = arith.mulf %15, %16 : vector<8x128xf32>
    %18 = arith.addf %13, %17 : vector<8x128xf32>
    %c0_7 = arith.constant 0 : index
    %c0_8 = arith.constant 0 : index
    %19 = vector.load %arg5[%c0_7, %c0_8] : memref<1x128xf32, #tpu.memory_space<vmem>>, vector<1x128xf32>
    %20 = vector.broadcast %19 : vector<1x128xf32> to vector<8x128xf32>
    %21 = arith.addf %18, %20 : vector<8x128xf32>
    %cst = arith.constant 0.000000e+00 : f32
    %22 = vector.broadcast %cst : f32 to vector<8x128xf32>
    %23 = arith.maximumf %21, %22 : vector<8x128xf32>
    %c0_9 = arith.constant 0 : index
    %c0_10 = arith.constant 0 : index
    %24 = vector.load %arg6[%c0_9, %c0_10] : memref<128x128xf32, #tpu.memory_space<vmem>>, vector<128x128xf32>
    %cst_11 = arith.constant dense<0.000000e+00> : vector<8x128xf32>
    %25 = tpu.matmul %23, %24, %cst_11 {dimension_numbers = #tpu.dot_dimension_numbers<[1], [0], [0], [1], [0, 0, 1, 1], [], []>} : vector<8x128xf32>, vector<128x128xf32>, vector<8x128xf32> -> vector<8x128xf32>
    %c0_12 = arith.constant 0 : index
    %c0_13 = arith.constant 0 : index
    %26 = vector.load %arg7[%c0_12, %c0_13] : memref<1x128xf32, #tpu.memory_space<vmem>>, vector<1x128xf32>
    %27 = vector.broadcast %26 : vector<1x128xf32> to vector<8x128xf32>
    %28 = arith.addf %25, %27 : vector<8x128xf32>
    %cst_14 = arith.constant 0.000000e+00 : f32
    %29 = vector.broadcast %cst_14 : f32 to vector<8x128xf32>
    %30 = arith.maximumf %28, %29 : vector<8x128xf32>
    %c0_15 = arith.constant 0 : index
    %c0_16 = arith.constant 0 : index
    %31 = vector.load %arg8[%c0_15, %c0_16] : memref<128x128xf32, #tpu.memory_space<vmem>>, vector<128x128xf32>
    %cst_17 = arith.constant dense<0.000000e+00> : vector<8x128xf32>
    %32 = tpu.matmul %30, %31, %cst_17 {dimension_numbers = #tpu.dot_dimension_numbers<[1], [0], [0], [1], [0, 0, 1, 1], [], []>} : vector<8x128xf32>, vector<128x128xf32>, vector<8x128xf32> -> vector<8x128xf32>
    %c0_18 = arith.constant 0 : index
    %c0_19 = arith.constant 0 : index
    %33 = vector.load %arg9[%c0_18, %c0_19] : memref<1x128xf32, #tpu.memory_space<vmem>>, vector<1x128xf32>
    %34 = vector.broadcast %33 : vector<1x128xf32> to vector<8x128xf32>
    %35 = arith.addf %32, %34 : vector<8x128xf32>
    %cst_20 = arith.constant 0.000000e+00 : f32
    %36 = vector.broadcast %cst_20 : f32 to vector<8x128xf32>
    %37 = arith.maximumf %35, %36 : vector<8x128xf32>
    %c0_21 = arith.constant 0 : index
    %c0_22 = arith.constant 0 : index
    %38 = vector.load %arg10[%c0_21, %c0_22] : memref<128x128xf32, #tpu.memory_space<vmem>>, vector<128x128xf32>
    %cst_23 = arith.constant dense<0.000000e+00> : vector<8x128xf32>
    %39 = tpu.matmul %37, %38, %cst_23 {dimension_numbers = #tpu.dot_dimension_numbers<[1], [0], [0], [1], [0, 0, 1, 1], [], []>} : vector<8x128xf32>, vector<128x128xf32>, vector<8x128xf32> -> vector<8x128xf32>
    %c0_24 = arith.constant 0 : index
    %c0_25 = arith.constant 0 : index
    %40 = vector.load %arg11[%c0_24, %c0_25] : memref<1x128xf32, #tpu.memory_space<vmem>>, vector<1x128xf32>
    %41 = vector.broadcast %40 : vector<1x128xf32> to vector<8x128xf32>
    %42 = arith.addf %39, %41 : vector<8x128xf32>
    %43 = vector.extract_strided_slice %42 {offsets = [0, 0], sizes = [8, 2], strides = [1, 1]} : vector<8x128xf32> to vector<8x2xf32>
    %c0_26 = arith.constant 0 : index
    %c0_27 = arith.constant 0 : index
    %44 = vector.load %arg12[%c0_26, %c0_27] : memref<8x2xf32, #tpu.memory_space<vmem>>, vector<8x2xf32>
    tpu.vector_store %arg12[%c0_26, %c0_27], %43 {strides = array<i32>} : memref<8x2xf32, #tpu.memory_space<vmem>>, vector<8x2xf32>,
    return
  }
  func.func @transform_0(%arg0: i32) -> (i32, i32) {
    %c0_i32 = arith.constant 0 : i32
    %c0_i32_0 = arith.constant 0 : i32
    return %arg0, %c0_i32 : i32, i32
  }
  func.func @transform_1(%arg0: i32) -> (i32, i32) {
    %c0_i32 = arith.constant 0 : i32
    %c0_i32_0 = arith.constant 0 : i32
    return %arg0, %c0_i32 : i32, i32
  }
  func.func @transform_2(%arg0: i32) -> (i32, i32) {
    %c0_i32 = arith.constant 0 : i32
    %c0_i32_0 = arith.constant 0 : i32
    %c0_i32_1 = arith.constant 0 : i32
    return %c0_i32, %c0_i32_0 : i32, i32
  }
  func.func @transform_3(%arg0: i32) -> (i32, i32) {
    %c0_i32 = arith.constant 0 : i32
    %c0_i32_0 = arith.constant 0 : i32
    %c0_i32_1 = arith.constant 0 : i32
    return %c0_i32, %c0_i32_0 : i32, i32
  }
  func.func @transform_4(%arg0: i32) -> (i32, i32) {
    %c0_i32 = arith.constant 0 : i32
    %c0_i32_0 = arith.constant 0 : i32
    %c0_i32_1 = arith.constant 0 : i32
    return %c0_i32, %c0_i32_0 : i32, i32
  }
  func.func @transform_5(%arg0: i32) -> (i32, i32) {
    %c0_i32 = arith.constant 0 : i32
    %c0_i32_0 = arith.constant 0 : i32
    %c0_i32_1 = arith.constant 0 : i32
    return %c0_i32, %c0_i32_0 : i32, i32
  }
  func.func @transform_6(%arg0: i32) -> (i32, i32) {
    %c0_i32 = arith.constant 0 : i32
    %c0_i32_0 = arith.constant 0 : i32
    %c0_i32_1 = arith.constant 0 : i32
    return %c0_i32, %c0_i32_0 : i32, i32
  }
  func.func @transform_7(%arg0: i32) -> (i32, i32) {
    %c0_i32 = arith.constant 0 : i32
    %c0_i32_0 = arith.constant 0 : i32
    %c0_i32_1 = arith.constant 0 : i32
    return %c0_i32, %c0_i32_0 : i32, i32
  }
  func.func @transform_8(%arg0: i32) -> (i32, i32) {
    %c0_i32 = arith.constant 0 : i32
    %c0_i32_0 = arith.constant 0 : i32
    %c0_i32_1 = arith.constant 0 : i32
    return %c0_i32, %c0_i32_0 : i32, i32
  }
  func.func @transform_9(%arg0: i32) -> (i32, i32) {
    %c0_i32 = arith.constant 0 : i32
    %c0_i32_0 = arith.constant 0 : i32
    %c0_i32_1 = arith.constant 0 : i32
    return %c0_i32, %c0_i32_0 : i32, i32
  }
  func.func @transform_10(%arg0: i32) -> (i32, i32) {
    %c0_i32 = arith.constant 0 : i32
    %c0_i32_0 = arith.constant 0 : i32
    %c0_i32_1 = arith.constant 0 : i32
    return %c0_i32, %c0_i32_0 : i32, i32
  }
  func.func @transform_11(%arg0: i32) -> (i32, i32) {
    %c0_i32 = arith.constant 0 : i32
    %c0_i32_0 = arith.constant 0 : i32
    return %arg0, %c0_i32 : i32, i32
  }
}

</mosaic_0001>

<bundles_post_ra>
// kernel: net_forward.1
= control target key start
LH: loop header
LB: loop body
LE: loop exit
PB: predicated region body
PF: predicated region fallthrough
CT: control target
= control target key end

     0   :  { %16 = vsyncpa [#allocation3], 0  ;;  %s444_s0 = inlined_call_operand.vmem [shape: f32[8,2], index: 0, kind: input, shape index: {}]   ;;  %s445_s1 = inlined_call_operand.vmem [shape: f32[8,1], index: 1, kind: input, shape index: {}]   ;;  %s446_s2 = inlined_call_operand.vmem [shape: f32[2,128], index: 2, kind: input, shape index: {}]   ;;  %s447_s3 = inlined_call_operand.vmem [shape: f32[1,128], index: 3, kind: input, shape index: {}]   ;;  %s448_s4 = inlined_call_operand.vmem [shape: f32[1,128], index: 4, kind: input, shape index: {}]   ;;  %s449_s5 = inlined_call_operand.hbm [shape: f32[128,128], index: 5, kind: input, shape index: {}]   ;;  %s450_s6 = inlined_call_operand.vmem [shape: f32[1,128], index: 6, kind: input, shape index: {}]   ;;  %s451_s7 = inlined_call_operand.hbm [shape: f32[128,128], index: 7, kind: input, shape index: {}]   ;;  %s452_s8 = inlined_call_operand.vmem [shape: f32[1,128], index: 8, kind: input, shape index: {}]   ;;  %s453_s9 = inlined_call_operand.hbm [shape: f32[128,128], index: 9, kind: input, shape index: {}]   ;;  %s454_s10 = inlined_call_operand.vmem [shape: f32[1,128], index: 10, kind: input, shape index: {}]   ;;  %s455_s11 = inlined_call_operand.vmem [shape: f32[8,2], index: 11, kind: output, shape index: {}]  }
   0x1   :  { %17 = vsyncpa [#allocation5], 0  ;;  %s47_s19 = sshll.u32 %s451_s7, 4  ;;  %s341_s20 = smov [#allocation4]   ;;  %s48_s19 = int_to_ptr.hbm [resolvable:$true] %s47_s19 }
   0x2   :  { %s49_s21 = sshll.u32 %s341_s20, 4  ;;  %s32_s24 = sshll.u32 %s449_s5, 4  ;;  %s50_s21 = int_to_ptr.vmem [resolvable:$true] %s49_s21  ;;  %s33_s24 = int_to_ptr.hbm [resolvable:$true] %s32_s24 }
   0x3   :  { %s342_s25 = smov 128   ;;  %s343_s26 = smov 8  }
   0x4   :  { %55 = dma.hbm_to_vmem [thread:$0]  %s48_s19, 2048, %s50_s21, [#allocation5], %s342_s25, %s342_s25, %s343_s26  }
   0x5   :  { %s344_s27 = smov [#allocation2]   ;;  %s62_s12 = sshll.u32 %s453_s9, 4  ;;  %s63_s12 = int_to_ptr.hbm [resolvable:$true] %s62_s12 }
   0x6   :  { %s34_s28 = sshll.u32 %s344_s27, 4  ;;  %s345_s7 = smov [#allocation6]   ;;  %s35_s28 = int_to_ptr.vmem [resolvable:$true] %s34_s28 }
   0x7   :  { %40 = dma.hbm_to_vmem [thread:$0]  %s33_s24, 2048, %s35_s28, [#allocation3], %s342_s25, %s342_s25, %s343_s26  }
   0x8   :  { %s64_s13 = sshll.u32 %s345_s7, 4  ;;  %s65_s13 = int_to_ptr.vmem [resolvable:$true] %s64_s13 }
   0x9   :  { %70 = dma.hbm_to_vmem [thread:$0]  %s63_s12, 2048, %s65_s13, [#allocation5], %s342_s25, %s342_s25, %s343_s26  }
   0xa   :  { %337 = dma.done.wait [#allocation3], 2048  }
   0xb   :  { %338 = vsyncadd [#allocation3], 4294965248 }
   0xc   :  { %339 = dma.done.wait [#allocation5], 4096  }
   0xd   :  { %340 = vsyncadd [#allocation5], 4294963200  ;;  %v346_v0 = vmov 0   ;;  %v85_v1 = vld [vmem:[%s444_s0] sm:$0xff]  ;;  %v134_v3 = vld [vmem:[#allocation2 + $0x78] sm:$0xff]  ;;  %v347_v8 = vmov 1  }
   0xe   :  { %256 = vset.pattern.permute.xlu0 %v346_v0  ;;  %258 = vset.pattern.permute.xlu1 %v346_v0  ;;  %v86_v2 = vld [vmem:[%s445_s1] sm:$0xff]  ;;  %v133_v4 = vld [vmem:[#allocation2 + $0x70] sm:$0xff]  ;;  %v132_v5 = vld [vmem:[#allocation2 + $0x68] sm:$0xff]  ;;  %vm241_vm0 = vcmask 15360  }
   0xf   :  { %90 = vperm.xlu0 %256, %v85_v1   ;;  %105 = vperm.xlu1 %258, %v86_v2   ;;  %v131_v6 = vld [vmem:[#allocation2 + $0x60] sm:$0xff]  ;;  %v130_v7 = vld [vmem:[#allocation2 + $0x58] sm:$0xff]  ;;  %v129_v9 = vld [vmem:[#allocation2 + $0x50] sm:$0xff] }
  0x10   :  { %139 = vmatpush.msra.mxu0 %v134_v3  ;;  %v128_v10 = vld [vmem:[#allocation2 + $0x48] sm:$0xff]  ;;  %v127_v11 = vld [vmem:[#allocation2 + $0x40] sm:$0xff]  ;;  %v126_v12 = vld [vmem:[#allocation2 + $0x38] sm:$0xff] }
  0x11   :  { %v125_v13 = vld [vmem:[#allocation2 + $0x30] sm:$0xff]  ;;  %v124_v14 = vld [vmem:[#allocation2 + $0x28] sm:$0xff]  ;;  %v123_v15 = vld [vmem:[#allocation2 + $0x20] sm:$0xff] }
  0x12   :  { %140 = vmatpush.msra.mxu0 %v133_v4  ;;  %v122_v16 = vld [vmem:[#allocation2 + $0x18] sm:$0xff]  ;;  %v121_v17 = vld [vmem:[#allocation2 + $0x10] sm:$0xff]  ;;  %v120_v18 = vld [vmem:[#allocation2 + $0x8] sm:$0xff] }
  0x13   :  { %v119_v19 = vld [vmem:[#allocation2] sm:$0xff]  ;;  %v175_v20 = vld [vmem:[#allocation4 + $0x78] sm:$0xff]  ;;  %v174_v21 = vld [vmem:[#allocation4 + $0x70] sm:$0xff] }
  0x14   :  { %141 = vmatpush.msra.mxu0 %v132_v5  ;;  %180 = vmatpush.msra.mxu1 %v175_v20  ;;  %v173_v22 = vld [vmem:[#allocation4 + $0x68] sm:$0xff]  ;;  %v172_v23 = vld [vmem:[#allocation4 + $0x60] sm:$0xff]  ;;  %v171_v24 = vld [vmem:[#allocation4 + $0x58] sm:$0xff] }
  0x15   :  { %v170_v25 = vld [vmem:[#allocation4 + $0x50] sm:$0xff]  ;;  %v169_v26 = vld [vmem:[#allocation4 + $0x48] sm:$0xff]  ;;  %v168_v28 = vld [vmem:[#allocation4 + $0x40] sm:$0xff] }
  0x16   :  { %142 = vmatpush.msra.mxu0 %v131_v6  ;;  %181 = vmatpush.msra.mxu1 %v174_v21  ;;  %v167_v29 = vld [vmem:[#allocation4 + $0x38] sm:$0xff]  ;;  %v87_v30 = vld [vmem:[%s446_s2] sm:$0x3]  ;;  %v166_v31 = vld [vmem:[#allocation4 + $0x30] sm:$0xff] }
  0x17   :  { %257 = vset.pattern.permute.xlu0 %v347_v8  ;;  %v93_v32 = vperm.slane %v87_v30, 0  ;;  %v99_v33 = vperm.slane %v87_v30, 1  ;;  %v260_v34 = vld [vmem:[%s447_s3] ss:$0 sm:$0xff]  ;;  %v165_v35 = vld [vmem:[#allocation4 + $0x28] sm:$0xff]  ;;  %v163_v42 = vld [vmem:[#allocation4 + $0x18] sm:$0xff] }
  0x18   :  { %96 = vperm.xlu0 %257, %v85_v1   ;;  %143 = vmatpush.msra.mxu0 %v130_v7  ;;  %v164_v37 = vld [vmem:[#allocation4 + $0x20] sm:$0xff]  ;;  %v162_v48 = vld [vmem:[#allocation4 + $0x10] sm:$0xff]  ;;  %v161_v49 = vld [vmem:[#allocation4 + $0x8] sm:$0xff] }
  0x19   :  { %182 = vmatpush.msra.mxu1 %v173_v22  ;;  %v261_v44 = vld [vmem:[%s448_s4] ss:$0 sm:$0xff]  ;;  %v216_v51 = vld [vmem:[#allocation6 + $0x78] sm:$0xff]  ;;  %v215_v52 = vld [vmem:[#allocation6 + $0x70] sm:$0xff] }
  0x1a   :  { %144 = vmatpush.msra.mxu0 %v129_v9  ;;  %v160_v50 = vld [vmem:[#allocation4] sm:$0xff]  ;;  %221 = vmatpush.msra.mxu2 %v216_v51  ;;  %v214_v53 = vld [vmem:[#allocation6 + $0x68] sm:$0xff]  ;;  %v212_v55 = vld [vmem:[#allocation6 + $0x58] sm:$0xff] }
  0x1b   :  { %183 = vmatpush.msra.mxu1 %v172_v23  ;;  %v213_v54 = vld [vmem:[#allocation6 + $0x60] sm:$0xff]  ;;  %v211_v56 = vld [vmem:[#allocation6 + $0x50] sm:$0xff]  ;;  %v210_v57 = vld [vmem:[#allocation6 + $0x48] sm:$0xff] }
  0x1c   :  { %145 = vmatpush.msra.mxu0 %v128_v10  ;;  %222 = vmatpush.msra.mxu2 %v215_v52  ;;  %v209_v58 = vld [vmem:[#allocation6 + $0x40] sm:$0xff]  ;;  %v208_v59 = vld [vmem:[#allocation6 + $0x38] sm:$0xff]  ;;  %v207_v60 = vld [vmem:[#allocation6 + $0x30] sm:$0xff] }
  0x1d   :  { %184 = vmatpush.msra.mxu1 %v171_v24  ;;  %v206_v61 = vld [vmem:[#allocation6 + $0x28] sm:$0xff]  ;;  %v205_v62 = vld [vmem:[#allocation6 + $0x20] sm:$0xff]  ;;  %v204_v63 = vld [vmem:[#allocation6 + $0x18] sm:$0xff] }
  0x1e   :  { %146 = vmatpush.msra.mxu0 %v127_v11  ;;  %223 = vmatpush.msra.mxu2 %v214_v53  ;;  %v203_v4 = vld [vmem:[#allocation6 + $0x10] sm:$0xff]  ;;  %v202_v5 = vld [vmem:[#allocation6 + $0x8] sm:$0xff]  ;;  %v201_v6 = vld [vmem:[#allocation6] sm:$0xff] }
  0x1f   :  { %185 = vmatpush.msra.mxu1 %v170_v25  ;;  %v263_v7 = vld [vmem:[%s452_s8] ss:$0 sm:$0xff] }
  0x20   :  { %259 = vset.pattern.permute.xlu0 %v346_v0  ;;  %147 = vmatpush.msra.mxu0 %v126_v12  ;;  %v262_v0 = vld [vmem:[%s450_s6] ss:$0 sm:$0xff] }
  0x21   :  { %186 = vmatpush.msra.mxu1 %v169_v26  ;;  %224 = vmatpush.msra.mxu2 %v213_v54  ;;  %v264_v11 = vld [vmem:[%s454_s10] ss:$0 sm:$0xff] }
  0x22   :  { %148 = vmatpush.msra.mxu0 %v125_v13 }
  0x23   :  { %187 = vmatpush.msra.mxu1 %v168_v28  ;;  %225 = vmatpush.msra.mxu2 %v212_v55 }
  0x24   :  { %149 = vmatpush.msra.mxu0 %v124_v14 }
  0x25   :  { %188 = vmatpush.msra.mxu1 %v167_v29  ;;  %226 = vmatpush.msra.mxu2 %v211_v56 }
  0x26   :  { %150 = vmatpush.msra.mxu0 %v123_v15 }
  0x27   :  { %189 = vmatpush.msra.mxu1 %v166_v31  ;;  %227 = vmatpush.msra.mxu2 %v210_v57 }
  0x28   :  { %151 = vmatpush.msra.mxu0 %v122_v16 }
  0x29   :  { %190 = vmatpush.msra.mxu1 %v165_v35  ;;  %228 = vmatpush.msra.mxu2 %v209_v58 }
  0x2a   :  { %152 = vmatpush.msra.mxu0 %v121_v17 }
  0x2b   :  { %191 = vmatpush.msra.mxu1 %v164_v37  ;;  %229 = vmatpush.msra.mxu2 %v208_v59 }
  0x2c   :  { %153 = vmatpush.msra.mxu0 %v120_v18 }
  0x2d   :  { %192 = vmatpush.msra.mxu1 %v163_v42  ;;  %230 = vmatpush.msra.mxu2 %v207_v60 }
  0x2e   :  { %154 = vmatpush.msra.mxu0 %v119_v19 }
  0x2f   :  { %193 = vmatpush.msra.mxu1 %v162_v48  ;;  %231 = vmatpush.msra.mxu2 %v206_v61 }
  0x31   :  { %194 = vmatpush.msra.mxu1 %v161_v49  ;;  %232 = vmatpush.msra.mxu2 %v205_v62 }
  0x33   :  { %195 = vmatpush.msra.mxu1 %v160_v50  ;;  %233 = vmatpush.msra.mxu2 %v204_v63 }
  0x35   :  { %234 = vmatpush.msra.mxu2 %v203_v4 }
  0x37   :  { %235 = vmatpush.msra.mxu2 %v202_v5 }
  0x39   :  { %236 = vmatpush.msra.mxu2 %v201_v6 }
  0x81   :  { %v91_v27 = vpop.permute.xlu0 %90  ;;  %v106_v36 = vpop.permute.xlu1 %105 }
  0x82   :  { %v94_v39 = vmul.f32 %v93_v32, %v91_v27  ;;  %v111_v41 = vmul.f32 %v260_v34, %v106_v36 }
  0x8a   :  { %v97_v38 = vpop.permute.xlu0 %96 }
  0x8b   :  { %v100_v40 = vmul.f32 %v99_v33, %v97_v38 }
  0x8d   :  { %v101_v43 = vadd.f32 %v100_v40, %v94_v39 }
  0x8f   :  { %v112_v45 = vadd.f32 %v111_v41, %v101_v43 }
  0x91   :  { %v117_v46 = vadd.f32 %v261_v44, %v112_v45 }
  0x93   :  { %v118_v47 = vmax.f32 %v117_v46, 0.0 }
  0x95   :  { %155 = vmatmul.f32.vlgmr.msra.gmra.mxu0 %v118_v47 }
 0x112   :  { %v156_v1 = vpop.f32.mrf.mxu0 }
 0x113   :  { %v157_v2 = vadd.f32 %v262_v0, %v156_v1 }
 0x115   :  { %v159_v3 = vmax.f32 %v157_v2, 0.0 }
 0x117   :  { %196 = vmatmul.f32.vlgmr.msra.gmra.mxu1 %v159_v3 }
 0x194   :  { %v197_v8 = vpop.f32.mrf.mxu1 }
 0x195   :  { %v198_v9 = vadd.f32 %v263_v7, %v197_v8 }
 0x197   :  { %v200_v10 = vmax.f32 %v198_v9, 0.0 }
 0x199   :  { %237 = vmatmul.f32.vlgmr.msra.gmra.mxu2 %v200_v10 }
 0x21c   :  { %v238_v12 = vpop.f32.mrf.mxu2 }
 0x21d   :  { %v239_v13 = vadd.f32 %v264_v11, %v238_v12 }
 0x21f   :  { %242 = vst.msk [vmem:[%s455_s11] sm:$0xff] %vm241_vm0, %v239_v13 }
 0x220   :  { %247 = vsyncpa [#allocation3], 1 }
 0x221   :  { %248 = vsyncpa [#allocation5], 1 }

</bundles_post_ra>
